<compile_context>
chip_gen: v7x
topology: tpu7x:2x2x1
jax: 0.10.0
libtpu: 0.0.40
codegen_flags: <defaults>
</compile_context>

<pallas_src>
import jax
import jax.numpy as jnp
from jax import lax
from jax.experimental import pallas as pl
from jax.experimental.pallas import tpu as pltpu


def skipgram_kernel(idx_ref, m_ref, b_ref, out_ref):
    # idx_ref: (tile_b, 1)     int32 -- token indices for this batch tile
    # m_ref:   (vocab, vocab)  bf16  -- fused  emb_table @ lin_w.T  (param prep)
    # b_ref:   (1, vocab)      f32   -- nn.Linear bias
    # out_ref: (tile_b, vocab) f32   -- per-token log_softmax
    tile_b = out_ref.shape[0]
    vocab = m_ref.shape[0]

    # Row-selection of the fused logit matrix via a one-hot matmul
    # (0/1 are exact in bf16, so the selected rows are exactly M's bf16 rows).
    idx = idx_ref[...]                                              # (tile_b, 1)
    col = lax.broadcasted_iota(jnp.int32, (tile_b, vocab), 1)       # (tile_b, vocab)
    onehot = (idx == col).astype(jnp.bfloat16)

    # Single lane-dense MXU matmul (K = N = vocab), f32 accumulation + f32 bias.
    logits = jnp.dot(onehot, m_ref[...],
                     preferred_element_type=jnp.float32) + b_ref[...]

    # Numerically stable log_softmax over the vocab axis (all f32).
    mx = jnp.max(logits, axis=-1, keepdims=True)
    shifted = logits - mx
    lse = jnp.log(jnp.sum(jnp.exp(shifted), axis=-1, keepdims=True))
    out_ref[...] = (shifted - lse).astype(out_ref.dtype)


def prepare_fused_params(emb_table, lin_w, lin_b):
    """One-time param prep: fuse Embedding table and Linear weight.

    Returns (M_bf16, bias_row_f32) with M = emb_table @ lin_w.T  (vocab, vocab).
    """
    vocab, dims = emb_table.shape
    assert lin_w.shape == (vocab, dims) and lin_b.shape == (vocab,)
    fused = jnp.dot(emb_table.astype(jnp.float32),
                    lin_w.astype(jnp.float32).T,
                    preferred_element_type=jnp.float32)
    return fused.astype(jnp.bfloat16), lin_b.reshape(1, vocab).astype(jnp.float32)


def _pick_tile_b(batch, tile_b):
    # >= 2 grid steps whenever the batch allows it (v7x has 2 TensorCores),
    # sublane-aligned (multiple of 8), capped at the requested tile size.
    if batch <= 8:
        return 8
    half = ((-(-batch // 2)) + 7) // 8 * 8     # round_up(cdiv(batch, 2), 8)
    return max(8, min(tile_b, half))


def skipgram_forward_fused(inputs, fused_m, bias_row, *, tile_b=256):
    """inputs: (B,) int token ids; fused_m: (vocab, vocab) bf16;
    bias_row: (1, vocab) f32.  Returns (B, vocab) f32 log-probabilities."""
    vocab = fused_m.shape[0]

    # Clamp indices so a bad token can never select a wrong/OOB row.
    idx = jnp.clip(inputs.reshape(-1).astype(jnp.int32), 0, vocab - 1)
    b = idx.shape[0]
    tb = _pick_tile_b(b, tile_b)
    n_tiles = pl.cdiv(b, tb)
    b_pad = n_tiles * tb
    if b_pad != b:
        idx = jnp.pad(idx, (0, b_pad - b))     # padded rows computed, then dropped
    idx2 = idx.reshape(b_pad, 1)

    cost = pl.CostEstimate(
        flops=2 * b_pad * vocab * vocab + 5 * b_pad * vocab,
        transcendentals=b_pad * vocab + b_pad,
        bytes_accessed=(idx2.size * 4 + fused_m.size * 2
                        + bias_row.size * 4 + b_pad * vocab * 4),
    )

    out = pl.pallas_call(
        skipgram_kernel,
        out_shape=jax.ShapeDtypeStruct((b_pad, vocab), jnp.float32),
        grid_spec=pltpu.PrefetchScalarGridSpec(
            num_scalar_prefetch=0,
            grid=(n_tiles,),
            in_specs=[
                pl.BlockSpec((tb, 1), lambda i: (i, 0)),          # token indices
                pl.BlockSpec((vocab, vocab), lambda i: (0, 0)),   # fused M (resident)
                pl.BlockSpec((1, vocab), lambda i: (0, 0)),       # bias    (resident)
            ],
            out_specs=pl.BlockSpec((tb, vocab), lambda i: (i, 0)),
        ),
        compiler_params=pltpu.CompilerParams(
            dimension_semantics=("parallel",),
            vmem_limit_bytes=32 * 1024 * 1024,
        ),
        cost_estimate=cost,
    )(idx2, fused_m, bias_row)
    return out[:b]


def skipgram_forward(inputs, emb_table, lin_w, lin_b, *, tile_b=256):
    """Convenience wrapper: param prep + fused forward."""
    fused_m, bias_row = prepare_fused_params(emb_table, lin_w, lin_b)
    return skipgram_forward_fused(inputs, fused_m, bias_row, tile_b=tile_b)


if __name__ == "__main__":
    VOCAB, DIMS = 256, 32
    B = 128

    key = jax.random.PRNGKey(0)
    k_emb, k_w, k_b, k_idx = jax.random.split(key, 4)

    # Deterministic "parameters" (nn.Embedding weight, nn.Linear weight/bias layouts).
    emb_table = jax.random.normal(k_emb, (VOCAB, DIMS), dtype=jnp.float32)
    lin_w = jax.random.normal(k_w, (VOCAB, DIMS), dtype=jnp.float32) * 0.05
    lin_b = jax.random.normal(k_b, (VOCAB,), dtype=jnp.float32) * 0.05
    inputs = jax.random.randint(k_idx, (B,), 0, VOCAB, dtype=jnp.int32)

    # Param prep once (fusion of the two matmuls), then run the kernel.
    fused_m, bias_row = prepare_fused_params(emb_table, lin_w, lin_b)
    out = jax.block_until_ready(skipgram_forward_fused(inputs, fused_m, bias_row))

    # Pure-JAX reference: per-token  log_softmax(emb[idx] @ W.T + b)  in f32.
    embeds = emb_table[inputs]                                   # (B, DIMS)
    logits_ref = embeds @ lin_w.T + lin_b[None, :]
    ref = jax.nn.log_softmax(logits_ref, axis=-1)

    assert out.shape == (B, VOCAB)
    # Tolerance covers bf16 rounding of the fused logit matrix (~1e-3 abs here).
    max_err = float(jnp.max(jnp.abs(out - ref)))
    assert jnp.allclose(out, ref, atol=2e-2, rtol=2e-2), max_err

    # Original forward shape: single token -> (1, vocab) (exercises padding path).
    one = jax.block_until_ready(skipgram_forward_fused(inputs[:1], fused_m, bias_row))
    assert one.shape == (1, VOCAB)
    assert jnp.allclose(one, ref[:1], atol=2e-2, rtol=2e-2)

    print("KERNEL_OK")
</pallas_src>

<mosaic_0001>
module attributes {stable_mosaic.version = 11 : i64} {
  func.func @skipgram_kernel(%arg0: i32, %arg1: memref<64x1xi32, #tpu.memory_space<vmem>>, %arg2: memref<256x256xbf16, #tpu.memory_space<vmem>>, %arg3: memref<1x256xf32, #tpu.memory_space<vmem>>, %arg4: memref<64x256xf32, #tpu.memory_space<vmem>>) attributes {dimension_semantics = [#tpu.dimension_semantics<parallel>], iteration_bounds = array<i64: 2>, scalar_prefetch = 0 : i64, scratch_operands = 0 : i64, tpu.core_type = #tpu.core_type<tc>, window_params = [{transform_indices = @transform_0, window_bounds = array<i64: 64, 1>}, {pipeline_mode = #tpu.pipeline_mode<synchronous>, transform_indices = @transform_1, window_bounds = array<i64: 256, 256>}, {pipeline_mode = #tpu.pipeline_mode<synchronous>, transform_indices = @transform_2, window_bounds = array<i64: 1, 256>}, {transform_indices = @transform_3, window_bounds = array<i64: 64, 256>}]} {
    %c0 = arith.constant 0 : index
    %c0_0 = arith.constant 0 : index
    %0 = vector.load %arg1[%c0, %c0_0] : memref<64x1xi32, #tpu.memory_space<vmem>>, vector<64x1xi32>
    %1 = tpu.iota {dimensions = array<i32: 1>} : vector<64x256xi32>
    %2 = vector.broadcast %0 : vector<64x1xi32> to vector<64x256xi32>
    %3 = arith.cmpi eq, %2, %1 : vector<64x256xi32>
    %4 = arith.extui %3 : vector<64x256xi1> to vector<64x256xi32>
    %5 = arith.sitofp %4 : vector<64x256xi32> to vector<64x256xf32>
    %6 = arith.truncf %5 : vector<64x256xf32> to vector<64x256xbf16>
    %c0_1 = arith.constant 0 : index
    %c0_2 = arith.constant 0 : index
    %7 = vector.load %arg2[%c0_1, %c0_2] : memref<256x256xbf16, #tpu.memory_space<vmem>>, vector<256x256xbf16>
    %cst = arith.constant dense<0.000000e+00> : vector<64x256xf32>
    %8 = tpu.matmul %6, %7, %cst {dimension_numbers = #tpu.dot_dimension_numbers<[1], [0], [0], [1], [0, 0, 1, 1], [], []>} : vector<64x256xbf16>, vector<256x256xbf16>, vector<64x256xf32> -> vector<64x256xf32>
    %c0_3 = arith.constant 0 : index
    %c0_4 = arith.constant 0 : index
    %9 = vector.load %arg3[%c0_3, %c0_4] : memref<1x256xf32, #tpu.memory_space<vmem>>, vector<1x256xf32>
    %10 = vector.broadcast %9 : vector<1x256xf32> to vector<64x256xf32>
    %11 = arith.addf %8, %10 : vector<64x256xf32>
    %cst_5 = arith.constant dense<0xFF800000> : vector<64xf32>
    %12 = vector.multi_reduction <maximumf>, %11, %cst_5 [1] : vector<64x256xf32> to vector<64xf32>
    %13 = vector.shape_cast %12 : vector<64xf32> to vector<64x1xf32>
    %14 = vector.broadcast %13 : vector<64x1xf32> to vector<64x256xf32>
    %15 = arith.subf %11, %14 : vector<64x256xf32>
    %16 = math.exp %15 : vector<64x256xf32>
    %cst_6 = arith.constant dense<0.000000e+00> : vector<64xf32>
    %17 = vector.multi_reduction <add>, %16, %cst_6 [1] : vector<64x256xf32> to vector<64xf32>
    %18 = vector.shape_cast %17 : vector<64xf32> to vector<64x1xf32>
    %19 = math.log %18 : vector<64x1xf32>
    %20 = vector.broadcast %19 : vector<64x1xf32> to vector<64x256xf32>
    %21 = arith.subf %15, %20 : vector<64x256xf32>
    %c0_7 = arith.constant 0 : index
    %c0_8 = arith.constant 0 : index
    %22 = vector.load %arg4[%c0_7, %c0_8] : memref<64x256xf32, #tpu.memory_space<vmem>>, vector<64x256xf32>
    tpu.vector_store %arg4[%c0_7, %c0_8], %21 {strides = array<i32>} : memref<64x256xf32, #tpu.memory_space<vmem>>, vector<64x256xf32>,
    return
  }
  func.func @transform_0(%arg0: i32) -> (i32, i32) {
    %c0_i32 = arith.constant 0 : i32
    %c0_i32_0 = arith.constant 0 : i32
    return %arg0, %c0_i32 : i32, i32
  }
  func.func @transform_1(%arg0: i32) -> (i32, i32) {
    %c0_i32 = arith.constant 0 : i32
    %c0_i32_0 = arith.constant 0 : i32
    %c0_i32_1 = arith.constant 0 : i32
    return %c0_i32, %c0_i32_0 : i32, i32
  }
  func.func @transform_2(%arg0: i32) -> (i32, i32) {
    %c0_i32 = arith.constant 0 : i32
    %c0_i32_0 = arith.constant 0 : i32
    %c0_i32_1 = arith.constant 0 : i32
    return %c0_i32, %c0_i32_0 : i32, i32
  }
  func.func @transform_3(%arg0: i32) -> (i32, i32) {
    %c0_i32 = arith.constant 0 : i32
    %c0_i32_0 = arith.constant 0 : i32
    return %arg0, %c0_i32 : i32, i32
  }
}

</mosaic_0001>

<bundles_post_ra>
// kernel: tpu_custom_call.1
= control target key start
LH: loop header
LB: loop body
LE: loop exit
PB: predicated region body
PF: predicated region fallthrough
CT: control target
= control target key end

     0   :  { %8 = vsyncpa [#allocation3], 0  ;;  %s1416_s0 = inlined_call_operand.vmem [shape: s32[128,1], index: 0, kind: input, shape index: {}]   ;;  %s1417_s1 = inlined_call_operand.hbm [shape: bf16[256,256], index: 1, kind: input, shape index: {}]   ;;  %s1418_s2 = inlined_call_operand.vmem [shape: f32[1,256], index: 2, kind: input, shape index: {}]   ;;  %s1419_s3 = inlined_call_operand.hbm [shape: f32[128,256], index: 3, kind: output, shape index: {}]  }
   0x1   :  { %9 = vsyncpa [#allocation4], 0 }
   0x2   :  { %11 = vsyncpa [#allocation4 + $0x1], 0  ;;  %s1179_s12 = smov 0   ;;  %s1181_s13 = smov 0  }
   0x3   :  { %s1183_s14 = smov 0   ;;  %s1185_s15 = smov 0  }
   0x4 LB: > { %s1200_s16 = sadd.s32 4294967295, %s1149_s15   ;;  %s788_s17 = sadd.s32 4294967294, %s1149_s15   ;;  %s1149_s15 = sphi %s1185_s15, %s1437_s15   ;;  %s1145_s14 = sphi %s1183_s14, %s1436_s14   ;;  %s1141_s13 = sphi %s1181_s13, %s1435_s13   ;;  %s1137_s12 = sphi %s1179_s12, %s1434_s12  }
   0x5   : > { %s1204_s18 = sadd.s32 1, %s1149_s15   ;;  %s92_s19 = sadd.s32 1, %s1145_s14 }
   0x6   : > { %s89_s20 = ssub.s32 %s1149_s15, %s1204_s18  ;;  %p102_p0 = scmp.ne.s32.totalorder %s1145_s14, %s1141_s13 }
   0x7   : > { %p90_p1 = scmp.eq.s32.totalorder %s89_s20, 0  ;;  %p103_p2 = scmp.eq.s32.totalorder %s1200_s16, 1 }
   0x8   : > { %p108_p3 = scmp.ne.s32.totalorder %s1141_s13, %s1137_s12  ;;  %p109_p4 = scmp.eq.s32.totalorder %s788_s17, 1 }
   0x9   : > { %s1215_s21 = scalar_select %p90_p1, %s1145_s14, %s92_s19  }
   0xa   : > { %p1217_p5 = por %p103_p2, %p102_p0  ;;  %p1221_p6 = por %p109_p4, %p108_p3 }
   0xb   : > { %p789_p7 = scmp.ge.s32.totalorder %s1149_s15, 1  ;;  %p116_p8 = scmp.lt.s32.totalorder %s1149_s15, 3 }
   0xc   : > { %s1423_s22 = scalar_select %p1217_p5, 1, 0 }
   0xd   : > { %s1424_s23 = scalar_select %p1221_p6, 1, 0 }
   0xe   : > { %p1420_p9 = scmp.eq.s32.totalorder %s1200_s16, 0  ;;  %p1228_p10 = pnand %p789_p7, %p116_p8 }
   0xf   : > { %s1151_s25 = smov [#allocation2]   ;;  %s1055_s30 = scalar_lea.hbm %s1417_s1, 4096 }
  0x10   : > { %s1425_s24 = scalar_select %p1228_p10, 1, 0 }
  0x11   : > { %s128_s26 = sshll.u32 %s1151_s25, 4  ;;  %p907_p11 = pneg %p1228_p10  ;;  %s129_s26 = int_to_ptr.vmem [resolvable:$true] %s128_s26 }
  0x12   : > { %p1056_p13 = scmp.ne.s32.totalorder %s1417_s1, %s1055_s30  ;;  %p1062_p3 = scmp.lt.u32.totalorder %s1055_s30, %s1417_s1 }
  0x13   : > { %p1236_p12 = pnand %p1420_p9, %p907_p11 }
  0x15   : > { %p1057_p0 = pneg %p1236_p12 }
  0x17   : > { %p1058_p1 = pnand %p1057_p0, %p1056_p13 }
  0x19   : > { %p1059_p2 = pneg %p1058_p1 }
  0x1b   : > { %p1064_p4 = pnand %p1062_p3, %p1059_p2 }
  0x1d   : > { %1067 = shalt.err (!%p1064_p4)
}
  0x1e   : > { %s1068_s8 = scalar_lea.vmem %s129_s26, 4096  ;;  %p1076_p9 = scmp.lt.s32.totalorder %s129_s26, %s129_s26 }
  0x1f   : > { %p1069_p7 = scmp.ne.s32.totalorder %s129_s26, %s1068_s8  ;;  %p1077_p6 = scmp.lt.s32.totalorder %s1068_s8, %s1068_s8 }
  0x21   : > { %p1071_p8 = pnand %p1069_p7, %p1057_p0  ;;  %p1078_p5 = por %p1077_p6, %p1076_p9 }
  0x23   : > { %p1072_p11 = pneg %p1071_p8 }
  0x25   : > { %p1079_p10 = pnand %p1078_p5, %p1072_p11 }
  0x27   : > { %1082 = shalt.err (!%p1079_p10)
}
  0x28   : > { %s1152_s9 = smov 128   ;;  %s1153_s10 = smov 8  }
  0x29   : > { %910 = dma.hbm_to_vmem [thread:$0]  (!%p1236_p12), %s1417_s1, 4096, %s129_s26, [#allocation3], %s1152_s9, %s1152_s9, %s1153_s10  }
  0x2a   : > { %p1427_p13 = scmp.ne.s32.totalorder %s1425_s24, 0 }
  0x2b   : > { %p1428_p1 = scmp.eq.s32.totalorder (!%p1427_p13), %s1200_s16, 0 }
  0x2c   : > { %156 = sbr.rel (%p1427_p13) target bundleno = 762 (0x2fa), region = 32 }
  0x33   : > { %1128 = dma.done.wait (%p1428_p1), [#allocation3], 4096   ;;  %p1429_p0 = pmov %p1428_p1 }
  0x34   : > { %s795_s19 = sshll.u32 %s1200_s16, 3  ;;  %v1154_v0 = vmov 0   ;;  %v959_v5 = vld [vmem:[#allocation2 + $0x4] ss:$8 sps:$4 sm:$0xff]   ;;  %v961_v6 = vld [vmem:[#allocation2] ss:$8 sps:$4 sm:$0xff]   ;;  %v195_v41 = vlaneseq }
  0x35   : > { %1130 = vsyncadd (%p1429_p0), [#allocation3], 4294963200  ;;  %958 = vset.pattern.permute.xlu1 %v1154_v0  ;;  %957 = vset.pattern.permute.xlu0 %v1154_v0  ;;  %p181_p5 = scmp.lt.s32.totalorder %s795_s19, 15  ;;  %v962_v7 = vld [vmem:[#allocation2 + $0x14] ss:$8 sps:$4 sm:$0xff]   ;;  %s177_s29 = sand.u32 1, %s1141_s13  }
  0x36   : > { %482 = vmatprep.subr.bf16.mxu0 %v959_v5  ;;  %869 = vmatprep.subr.bf16.mxu1 %v959_v5  ;;  %v964_v10 = vld [vmem:[#allocation2 + $0x10] ss:$8 sps:$4 sm:$0xff]   ;;  %v965_v11 = vld [vmem:[#allocation2 + $0x24] ss:$8 sps:$4 sm:$0xff]   ;;  %v967_v14 = vld [vmem:[#allocation2 + $0x20] ss:$8 sps:$4 sm:$0xff]  }
  0x37   : > { %s1439_s19 = smov (!%p181_p5, %s795_s19), 15  ;;  %483 = vmatpush1.bf16.msra.mxu0 %v961_v6  ;;  %885 = vmatpush1.bf16.msra.mxu1 %v961_v6  ;;  %v968_v15 = vld [vmem:[#allocation2 + $0x34] ss:$8 sps:$4 sm:$0xff]   ;;  %v970_v16 = vld [vmem:[#allocation2 + $0x30] ss:$8 sps:$4 sm:$0xff]   ;;  %v196_v42 = vand.u32 127, %v195_v41 }
  0x38   : > { %s796_s20 = sshll.u32 %s1439_s19, 3  ;;  %484 = vmatprep.subr.bf16.mxu0 %v962_v7  ;;  %870 = vmatprep.subr.bf16.mxu1 %v962_v7  ;;  %v971_v17 = vld [vmem:[#allocation2 + $0x44] ss:$8 sps:$4 sm:$0xff]   ;;  %v973_v18 = vld [vmem:[#allocation2 + $0x40] ss:$8 sps:$4 sm:$0xff]   ;;  %v313_v54 = vshrl.u32 %v195_v41, 7 }
  0x39   : > { %s184_s26 = scalar_lea.vmem %s1416_s0, %s796_s20  ;;  %v974_v19 = vld [vmem:[#allocation2 + $0x54] ss:$8 sps:$4 sm:$0xff]   ;;  %v976_v20 = vld [vmem:[#allocation2 + $0x50] ss:$8 sps:$4 sm:$0xff]   ;;  %v977_v21 = vld [vmem:[#allocation2 + $0x64] ss:$8 sps:$4 sm:$0xff]  }
  0x3a   : > { %v191_v1 = vld [vmem:[%s184_s26 + $0x20] sm:$0xff]  ;;  %v192_v3 = vld [vmem:[%s184_s26 + $0x28] sm:$0xff]  ;;  %v190_v8 = vld [vmem:[%s184_s26 + $0x18] sm:$0xff]  ;;  %v197_v45 = vadd.s32 128, %v196_v42  ;;  %v1155_v51 = vmov 1.0|1.0  }
  0x3b   : > { %v187_v2 = vld [vmem:[%s184_s26] sm:$0xff]  ;;  %211 = vperm.xlu1 %958, %v191_v1   ;;  %v188_v4 = vld [vmem:[%s184_s26 + $0x8] sm:$0xff]  ;;  %v189_v9 = vld [vmem:[%s184_s26 + $0x10] sm:$0xff]  ;;  %485 = vmatpush1.bf16.msra.mxu0 %v964_v10  ;;  %v314_v55 = vsub.s32 0, %v313_v54  ;;  %v318_v57 = vsub.s32 1, %v313_v54  ;;  %s794_s30 = sshll.u32 %s177_s29, 7 }
  0x3c   : > { %199 = vperm.xlu0 %957, %v187_v2   ;;  %v194_v12 = vld [vmem:[%s184_s26 + $0x38] sm:$0xff]  ;;  %v193_v13 = vld [vmem:[%s184_s26 + $0x30] sm:$0xff]  ;;  %886 = vmatpush1.bf16.msra.mxu1 %v964_v10  ;;  %v310_v56 = vld [vmem:[%s1418_s2] sm:$0x3]  ;;  %s1332_s4 = scalar_lea.vmem [#allocation5], %s794_s30  ;;  %s868_s5 = sshll.u32 %s1200_s16, 11 }
  0x3d   : > { %486 = vmatprep.subr.bf16.mxu0 %v965_v11  ;;  %871 = vmatprep.subr.bf16.mxu1 %v965_v11  ;;  %v979_v22 = vld [vmem:[#allocation2 + $0x60] ss:$8 sps:$4 sm:$0xff]   ;;  %v980_v23 = vld [vmem:[#allocation2 + $0x74] ss:$8 sps:$4 sm:$0xff]   ;;  %v982_v24 = vld [vmem:[#allocation2 + $0x70] ss:$8 sps:$4 sm:$0xff]   ;;  %v315_v58 = vrot.slane %v310_v56, %v314_v55  ;;  %v319_v59 = vrot.slane %v310_v56, %v318_v57  ;;  %s1365_s9 = scalar_lea.hbm %s1419_s3, %s868_s5 }
  0x3e   : > { %v983_v25 = vld [vmem:[#allocation2 + $0x84] ss:$8 sps:$4 sm:$0xff]   ;;  %v985_v26 = vld [vmem:[#allocation2 + $0x80] ss:$8 sps:$4 sm:$0xff]   ;;  %v986_v27 = vld [vmem:[#allocation2 + $0x94] ss:$8 sps:$4 sm:$0xff]  }
  0x3f   : > { %214 = vperm.xlu1 %958, %v192_v3   ;;  %487 = vmatpush1.bf16.msra.mxu0 %v967_v14  ;;  %v988_v28 = vld [vmem:[#allocation2 + $0x90] ss:$8 sps:$4 sm:$0xff]   ;;  %v989_v29 = vld [vmem:[#allocation2 + $0xa4] ss:$8 sps:$4 sm:$0xff]   ;;  %v991_v30 = vld [vmem:[#allocation2 + $0xa0] ss:$8 sps:$4 sm:$0xff]  }
  0x40   : > { %202 = vperm.xlu0 %957, %v188_v4   ;;  %887 = vmatpush1.bf16.msra.mxu1 %v967_v14  ;;  %v992_v31 = vld [vmem:[#allocation2 + $0xb4] ss:$8 sps:$4 sm:$0xff]   ;;  %v994_v32 = vld [vmem:[#allocation2 + $0xb0] ss:$8 sps:$4 sm:$0xff]   ;;  %v995_v33 = vld [vmem:[#allocation2 + $0xc4] ss:$8 sps:$4 sm:$0xff]  }
  0x41   : > { %488 = vmatprep.subr.bf16.mxu0 %v968_v15  ;;  %872 = vmatprep.subr.bf16.mxu1 %v968_v15  ;;  %v997_v34 = vld [vmem:[#allocation2 + $0xc0] ss:$8 sps:$4 sm:$0xff]   ;;  %v998_v35 = vld [vmem:[#allocation2 + $0xd4] ss:$8 sps:$4 sm:$0xff]   ;;  %v1000_v36 = vld [vmem:[#allocation2 + $0xd0] ss:$8 sps:$4 sm:$0xff]  }
  0x42   : > { %v1001_v37 = vld [vmem:[#allocation2 + $0xe4] ss:$8 sps:$4 sm:$0xff]   ;;  %v1003_v38 = vld [vmem:[#allocation2 + $0xe0] ss:$8 sps:$4 sm:$0xff]   ;;  %v1004_v39 = vld [vmem:[#allocation2 + $0xf4] ss:$8 sps:$4 sm:$0xff]  }
  0x43   : > { %208 = vperm.xlu1 %958, %v190_v8   ;;  %489 = vmatpush1.bf16.msra.mxu0 %v970_v16  ;;  %v1006_v40 = vld [vmem:[#allocation2 + $0xf0] ss:$8 sps:$4 sm:$0xff]   ;;  %s714_s6 = sshll.u32 %s1332_s4, 4  ;;  %s1375_s16 = scalar_lea.sflag [#allocation4], %s177_s29  ;;  %s1367_s6 = int_to_ptr.vmem [resolvable:$true] %s714_s6 }
  0x44   : > { %205 = vperm.xlu0 %957, %v189_v9   ;;  %888 = vmatpush1.bf16.msra.mxu1 %v970_v16  ;;  %s1083_s10 = scalar_lea.vmem %s1367_s6, 2048  ;;  %p1432_p9 = scmp.ne.s32.totalorder %s1423_s22, 0 }
  0x45   : > { %490 = vmatprep.subr.bf16.mxu0 %v971_v17  ;;  %873 = vmatprep.subr.bf16.mxu1 %v971_v17  ;;  %p1084_p6 = scmp.ne.s32.totalorder %s1367_s6, %s1083_s10  ;;  %s1156_s11 = smov [#allocation5]  }
  0x46   : > { %s1087_s17 = sshll.u32 %s1156_s11, 4  ;;  %s1088_s17 = int_to_ptr.vmem [resolvable:$false] %s1087_s17 }
  0x47   : > { %220 = vperm.xlu1 %958, %v194_v12   ;;  %491 = vmatpush1.bf16.msra.mxu0 %v973_v18  ;;  %p1085_p10 = pnand %p1084_p6, %p1432_p9  ;;  %s1089_s19 = scalar_lea.vmem %s1088_s17, 4096 }
  0x48   : > { %217 = vperm.xlu0 %957, %v193_v13   ;;  %889 = vmatpush1.bf16.msra.mxu1 %v973_v18  ;;  %p1090_p2 = scmp.lt.s32.totalorder %s1367_s6, %s1088_s17  ;;  %p1091_p3 = scmp.lt.s32.totalorder %s1089_s19, %s1083_s10 }
  0x49   : > { %492 = vmatprep.subr.bf16.mxu0 %v974_v19  ;;  %874 = vmatprep.subr.bf16.mxu1 %v974_v19  ;;  %p1086_p12 = pneg %p1085_p10 }
  0x4a   : > { %p1092_p4 = por %p1091_p3, %p1090_p2 }
  0x4b   : > { %493 = vmatpush1.bf16.msra.mxu0 %v976_v20 }
  0x4c   : > { %890 = vmatpush1.bf16.msra.mxu1 %v976_v20  ;;  %494 = vmatprep.subr.bf16.mxu0 %v977_v21  ;;  %p1093_p7 = pnand %p1092_p4, %p1086_p12 }
  0x4d   : > { %875 = vmatprep.subr.bf16.mxu1 %v977_v21 }
  0x4f   : > { %495 = vmatpush1.bf16.msra.mxu0 %v979_v22 }
  0x50   : > { %891 = vmatpush1.bf16.msra.mxu1 %v979_v22  ;;  %496 = vmatprep.subr.bf16.mxu0 %v980_v23 }
  0x51   : > { %876 = vmatprep.subr.bf16.mxu1 %v980_v23 }
  0x53   : > { %497 = vmatpush1.bf16.msra.mxu0 %v982_v24 }
  0x54   : > { %892 = vmatpush1.bf16.msra.mxu1 %v982_v24  ;;  %498 = vmatprep.subr.bf16.mxu0 %v983_v25 }
  0x55   : > { %877 = vmatprep.subr.bf16.mxu1 %v983_v25 }
  0x57   : > { %499 = vmatpush1.bf16.msra.mxu0 %v985_v26 }
  0x58   : > { %893 = vmatpush1.bf16.msra.mxu1 %v985_v26  ;;  %500 = vmatprep.subr.bf16.mxu0 %v986_v27 }
  0x59   : > { %878 = vmatprep.subr.bf16.mxu1 %v986_v27 }
  0x5b   : > { %501 = vmatpush1.bf16.msra.mxu0 %v988_v28 }
  0x5c   : > { %894 = vmatpush1.bf16.msra.mxu1 %v988_v28  ;;  %502 = vmatprep.subr.bf16.mxu0 %v989_v29 }
  0x5d   : > { %879 = vmatprep.subr.bf16.mxu1 %v989_v29 }
  0x5f   : > { %503 = vmatpush1.bf16.msra.mxu0 %v991_v30 }
  0x60   : > { %895 = vmatpush1.bf16.msra.mxu1 %v991_v30  ;;  %504 = vmatprep.subr.bf16.mxu0 %v992_v31 }
  0x61   : > { %880 = vmatprep.subr.bf16.mxu1 %v992_v31 }
  0x63   : > { %505 = vmatpush1.bf16.msra.mxu0 %v994_v32 }
  0x64   : > { %896 = vmatpush1.bf16.msra.mxu1 %v994_v32  ;;  %506 = vmatprep.subr.bf16.mxu0 %v995_v33 }
  0x65   : > { %881 = vmatprep.subr.bf16.mxu1 %v995_v33 }
  0x67   : > { %507 = vmatpush1.bf16.msra.mxu0 %v997_v34 }
  0x68   : > { %897 = vmatpush1.bf16.msra.mxu1 %v997_v34  ;;  %508 = vmatprep.subr.bf16.mxu0 %v998_v35 }
  0x69   : > { %882 = vmatprep.subr.bf16.mxu1 %v998_v35 }
  0x6b   : > { %509 = vmatpush1.bf16.msra.mxu0 %v1000_v36 }
  0x6c   : > { %898 = vmatpush1.bf16.msra.mxu1 %v1000_v36  ;;  %510 = vmatprep.subr.bf16.mxu0 %v1001_v37 }
  0x6d   : > { %883 = vmatprep.subr.bf16.mxu1 %v1001_v37 }
  0x6f   : > { %511 = vmatpush1.bf16.msra.mxu0 %v1003_v38 }
  0x70   : > { %899 = vmatpush1.bf16.msra.mxu1 %v1003_v38  ;;  %512 = vmatprep.subr.bf16.mxu0 %v1004_v39 }
  0x71   : > { %884 = vmatprep.subr.bf16.mxu1 %v1004_v39 }
  0x73   : > { %513 = vmatpush1.bf16.msra.mxu0 %v1006_v40 }
  0x74   : > { %900 = vmatpush1.bf16.msra.mxu1 %v1006_v40 }
  0xba   : > { %v212_v43 = vpop.permute.xlu1 %211 }
  0xbb   : > { %v200_v44 = vpop.permute.xlu0 %199  ;;  %vm230_vm0 = vcmp.eq.s32.totalorder %v212_v43, %v196_v42  ;;  %vm231_vm10 = vcmp.eq.s32.totalorder %v212_v43, %v197_v45 }
  0xbc   : > { %vm222_vm4 = vcmp.eq.s32.totalorder %v200_v44, %v196_v42  ;;  %vm223_vm8 = vcmp.eq.s32.totalorder %v200_v44, %v197_v45 }
  0xbe   : > { %v215_v46 = vpop.permute.xlu1 %214 }
  0xbf   : > { %v203_v47 = vpop.permute.xlu0 %202  ;;  %vm232_vm1 = vcmp.eq.s32.totalorder %v215_v46, %v196_v42  ;;  %vm233_vm6 = vcmp.eq.s32.totalorder %v215_v46, %v197_v45 }
  0xc0   : > { %vm224_vm2 = vcmp.eq.s32.totalorder %v203_v47, %v196_v42  ;;  %vm225_vm3 = vcmp.eq.s32.totalorder %v203_v47, %v197_v45  ;;  %vm1266_vm5 = vmpackc.low %vm232_vm1, %vm230_vm0 }
  0xc1   : > { %vm847_vm7 = vmpackc.low %vm224_vm2, %vm222_vm4 }
  0xc2   : > { %vm845_vm9 = vmpackc.low %vm225_vm3, %vm223_vm8  ;;  %v209_v49 = vpop.permute.xlu1 %208 }
  0xc3   : > { %v206_v50 = vpop.permute.xlu0 %205  ;;  %846 = vmatprep.mubr.msk.bf16.mxu0 %vm845_vm9, %v1155_v51  ;;  %vm853_vm11 = vmpackc.low %vm233_vm6, %vm231_vm10  ;;  %vm229_vm12 = vcmp.eq.s32.totalorder %v209_v49, %v197_v45  ;;  %vm228_vm3 = vcmp.eq.s32.totalorder %v209_v49, %v196_v42 }
  0xc4   : > { %vm227_vm13 = vcmp.eq.s32.totalorder %v206_v50, %v197_v45  ;;  %854 = vmatprep.mubr.msk.bf16.mxu1 %vm853_vm11, %v1155_v51  ;;  %848 = vmatmul.mubr.msk.bf16.vlgmr.msra.gmra.mrb[0].mxu0 %vm847_vm7, %v1155_v51  ;;  %vm226_vm4 = vcmp.eq.s32.totalorder %v206_v50, %v196_v42 }
  0xc5   : > { %vm849_vm14 = vmpackc.low %vm229_vm12, %vm227_vm13  ;;  %856 = vmatmul.mubr.msk.bf16.vlgmr.msra.gmra.mrb[0].mxu1 %vm1266_vm5, %v1155_v51 }
  0xc6   : > { %850 = vmatprep.mubr.msk.bf16.mxu0 %vm849_vm14, %v1155_v51  ;;  %v221_v52 = vpop.permute.xlu1 %220  ;;  %vm851_vm9 = vmpackc.low %vm228_vm3, %vm226_vm4 }
  0xc7   : > { %v218_v53 = vpop.permute.xlu0 %217  ;;  %vm236_vm15 = vcmp.eq.s32.totalorder %v221_v52, %v196_v42  ;;  %vm237_vm0 = vcmp.eq.s32.totalorder %v221_v52, %v197_v45 }
  0xc8   : > { %vm234_vm1 = vcmp.eq.s32.totalorder %v218_v53, %v196_v42  ;;  %vm235_vm2 = vcmp.eq.s32.totalorder %v218_v53, %v197_v45 }
  0xc9   : > { %vm857_vm8 = vmpackc.low %vm237_vm0, %vm235_vm2 }
  0xca   : > { %858 = vmatprep.mubr.msk.bf16.mxu1 %vm857_vm8, %v1155_v51  ;;  %vm859_vm6 = vmpackc.low %vm236_vm15, %vm234_vm1 }
  0xcc   : > { %852 = vmatmul.mubr.msk.bf16.gmra.mrb[4].mxu0 %vm851_vm9, %v1155_v51 }
  0xcd   : > { %860 = vmatmul.mubr.msk.bf16.gmra.mrb[4].mxu1 %vm859_vm6, %v1155_v51 }
 0x197   : > { %v516_v60 = vpop.f32.mrb[0].mxu0 }
 0x198   : > { %v517_v61 = vadd.f32 %v516_v60, %v315_v58  ;;  %v536_v62 = vpop.f32.mrb[0].mxu1  ;;  %v518_v63 = vpop.f32.mrb[1].mxu0 }
 0x199   : > { %v537_v0 = vadd.f32 %v536_v62, %v315_v58  ;;  %v519_v1 = vadd.f32 %v518_v63, %v319_v59  ;;  %v538_v2 = vpop.f32.mrb[1].mxu1  ;;  %v520_v3 = vpop.f32.mrb[2].mxu0 }
 0x19a   : > { %v539_v4 = vadd.f32 %v538_v2, %v319_v59  ;;  %v521_v5 = vadd.f32 %v520_v3, %v315_v58  ;;  %v540_v6 = vpop.f32.mrb[2].mxu1  ;;  %v522_v7 = vpop.f32.mrb[3].mxu0 }
 0x19b   : > { %v541_v8 = vadd.f32 %v540_v6, %v315_v58  ;;  %v523_v9 = vadd.f32 %v522_v7, %v319_v59  ;;  %v542_v10 = vpop.f32.mrb[3].mxu1  ;;  %v555_v11 = vmax.f32 %v517_v61, %v519_v1 }
 0x19c   : > { %v543_v12 = vadd.f32 %v542_v10, %v319_v59  ;;  %v567_v13 = vmax.f32 %v537_v0, %v539_v4 }
 0x19d   : > { %556 = vmax.xlane.f32.xlu0 %v555_v11  ;;  %v558_v19 = vmax.f32 %v521_v5, %v523_v9 }
 0x19e   : > { %568 = vmax.xlane.f32.xlu1 %v567_v13  ;;  %v570_v15 = vmax.f32 %v541_v8, %v543_v12 }
 0x19f   : > { %v526_v14 = vpop.f32.mrb[4].mxu0 }
 0x1a0   : > { %v527_v16 = vadd.f32 %v526_v14, %v315_v58  ;;  %v546_v17 = vpop.f32.mrb[4].mxu1  ;;  %v528_v18 = vpop.f32.mrb[5].mxu0 }
 0x1a1   : > { %v547_v20 = vadd.f32 %v546_v17, %v315_v58  ;;  %v529_v21 = vadd.f32 %v528_v18, %v319_v59  ;;  %v548_v22 = vpop.f32.mrb[5].mxu1  ;;  %571 = vmax.xlane.f32.xlu0 %v570_v15  ;;  %v530_v23 = vpop.f32.mrb[6].mxu0 }
 0x1a2   : > { %v549_v24 = vadd.f32 %v548_v22, %v319_v59  ;;  %559 = vmax.xlane.f32.xlu1 %v558_v19  ;;  %v531_v25 = vadd.f32 %v530_v23, %v315_v58  ;;  %v550_v26 = vpop.f32.mrb[6].mxu1  ;;  %v532_v27 = vpop.f32.mrb[7].mxu0 }
 0x1a3   : > { %v1275_v28 = vadd.f32 %v550_v26, %v315_v58  ;;  %v533_v29 = vadd.f32 %v532_v27, %v319_v59  ;;  %v552_v30 = vpop.f32.mrb[7].mxu1  ;;  %v561_v31 = vmax.f32 %v527_v16, %v529_v21 }
 0x1a4   : > { %v553_v32 = vadd.f32 %v552_v30, %v319_v59  ;;  %v573_v33 = vmax.f32 %v547_v20, %v549_v24 }
 0x1a5   : > { %562 = vmax.xlane.f32.xlu0 %v561_v31  ;;  %v564_v34 = vmax.f32 %v531_v25, %v533_v29 }
 0x1a6   : > { %574 = vmax.xlane.f32.xlu1 %v573_v33  ;;  %v576_v35 = vmax.f32 %v1275_v28, %v553_v32 }
 0x1a9   : > { %565 = vmax.xlane.f32.xlu0 %v564_v34 }
 0x1ad   : > { %577 = vmax.xlane.f32.xlu0 %v576_v35 }
 0x22a   : > { %v557_v36 = vpop.xlane.xlu0 %556 }
 0x22b   : > { %v569_v37 = vpop.xlane.xlu1 %568  ;;  %v1278_v38 = vsub.f32 %v517_v61, %v557_v36  ;;  %v1280_v39 = vsub.f32 %v519_v1, %v557_v36 }
 0x22c   : > { %v1282_v40 = vsub.f32 %v537_v0, %v569_v37  ;;  %v1284_v41 = vsub.f32 %v539_v4, %v569_v37 }
 0x22d   : > { %v595_v42 = vmul.f32 1.442695, %v1278_v38  ;;  %v597_v45 = vmul.f32 1.442695, %v1280_v39 }
 0x22e   : > { %v611_v43 = vmul.f32 1.442695, %v1282_v40  ;;  %v613_v44 = vmul.f32 1.442695, %v1284_v41  ;;  %v572_v46 = vpop.xlane.xlu0 %571 }
 0x22f   : > { %1007 = vpow2.f32 %v595_v42  ;;  %v560_v47 = vpop.xlane.xlu1 %559  ;;  %v1290_v48 = vsub.f32 %v541_v8, %v572_v46  ;;  %v1292_v49 = vsub.f32 %v543_v12, %v572_v46 }
 0x230   : > { %1009 = vpow2.f32 %v611_v43  ;;  %v1294_v50 = vsub.f32 %v521_v5, %v560_v47  ;;  %v1296_v51 = vsub.f32 %v523_v9, %v560_v47 }
 0x231   : > { %1011 = vpow2.f32 %v613_v44  ;;  %v615_v52 = vmul.f32 1.442695, %v1290_v48  ;;  %v617_v55 = vmul.f32 1.442695, %v1292_v49 }
 0x232   : > { %1013 = vpow2.f32 %v597_v45  ;;  %v599_v53 = vmul.f32 1.442695, %v1294_v50  ;;  %v601_v54 = vmul.f32 1.442695, %v1296_v51  ;;  %v563_v56 = vpop.xlane.xlu0 %562 }
 0x233   : > { %1015 = vpow2.f32 %v615_v52  ;;  %v575_v57 = vpop.xlane.xlu1 %574  ;;  %v1302_v58 = vsub.f32 %v527_v16, %v563_v56  ;;  %v1304_v59 = vsub.f32 %v529_v21, %v563_v56 }
 0x234   : > { %1017 = vpow2.f32 %v599_v53  ;;  %v1306_v60 = vsub.f32 %v547_v20, %v575_v57  ;;  %v1308_v61 = vsub.f32 %v549_v24, %v575_v57 }
 0x235   : > { %1019 = vpow2.f32 %v601_v54  ;;  %v603_v62 = vmul.f32 1.442695, %v1302_v58  ;;  %v605_v1 = vmul.f32 1.442695, %v1304_v59 }
 0x236   : > { %1021 = vpow2.f32 %v617_v55  ;;  %v619_v63 = vmul.f32 1.442695, %v1306_v60  ;;  %v621_v0 = vmul.f32 1.442695, %v1308_v61  ;;  %v566_v2 = vpop.xlane.xlu0 %565 }
 0x237   : > { %1023 = vpow2.f32 %v603_v62  ;;  %v1314_v3 = vsub.f32 %v531_v25, %v566_v2  ;;  %v1316_v4 = vsub.f32 %v533_v29, %v566_v2 }
 0x238   : > { %1025 = vpow2.f32 %v619_v63 }
 0x239   : > { %v1008_v5 = vpop.eup %1007  ;;  %1027 = vpow2.f32 %v621_v0  ;;  %v607_v6 = vmul.f32 1.442695, %v1314_v3  ;;  %v609_v7 = vmul.f32 1.442695, %v1316_v4 }
 0x23a   : > { %v1010_v8 = vpop.eup %1009  ;;  %1029 = vpow2.f32 %v605_v1  ;;  %v578_v9 = vpop.xlane.xlu0 %577 }
 0x23b   : > { %v1012_v10 = vpop.eup %1011  ;;  %1031 = vpow2.f32 %v607_v6  ;;  %v1321_v11 = vsub.f32 %v1275_v28, %v578_v9  ;;  %v1323_v12 = vsub.f32 %v553_v32, %v578_v9 }
 0x23c   : > { %v1014_v13 = vpop.eup %1013  ;;  %1033 = vpow2.f32 %v609_v7  ;;  %v639_v23 = vadd.f32 %v1012_v10, %v1010_v8 }
 0x23d   : > { %v1016_v14 = vpop.eup %1015  ;;  %v623_v15 = vmul.f32 1.442695, %v1321_v11  ;;  %v625_v16 = vmul.f32 1.442695, %v1323_v12  ;;  %v627_v17 = vadd.f32 %v1014_v13, %v1008_v5 }
 0x23e   : > { %v1018_v18 = vpop.eup %1017 }
 0x23f   : > { %v1020_v19 = vpop.eup %1019  ;;  %1035 = vpow2.f32 %v623_v15  ;;  %628 = vadd.xlane.f32.xlu1 %v627_v17 }
 0x240   : > { %v1022_v20 = vpop.eup %1021  ;;  %1037 = vpow2.f32 %v625_v16  ;;  %v630_v21 = vadd.f32 %v1020_v19, %v1018_v18 }
 0x241   : > { %v1024_v22 = vpop.eup %1023  ;;  %v642_v27 = vadd.f32 %v1022_v20, %v1016_v14 }
 0x242   : > { %v1026_v24 = vpop.eup %1025  ;;  %631 = vadd.xlane.f32.xlu0 %v630_v21 }
 0x243   : > { %v1028_v25 = vpop.eup %1027  ;;  %640 = vadd.xlane.f32.xlu1 %v639_v23 }
 0x244   : > { %v1030_v26 = vpop.eup %1029  ;;  %v645_v33 = vadd.f32 %v1028_v25, %v1026_v24 }
 0x245   : > { %v1032_v28 = vpop.eup %1031  ;;  %v633_v29 = vadd.f32 %v1030_v26, %v1024_v22 }
 0x246   : > { %v1034_v30 = vpop.eup %1033  ;;  %643 = vadd.xlane.f32.xlu0 %v642_v27 }
 0x247   : > { %634 = vadd.xlane.f32.xlu1 %v633_v29  ;;  %v636_v31 = vadd.f32 %v1034_v30, %v1032_v28 }
 0x249   : > { %v1036_v32 = vpop.eup %1035 }
 0x24a   : > { %v1038_v34 = vpop.eup %1037  ;;  %637 = vadd.xlane.f32.xlu0 %v636_v31 }
 0x24b   : > { %646 = vadd.xlane.f32.xlu1 %v645_v33  ;;  %v648_v35 = vadd.f32 %v1038_v34, %v1036_v32 }
 0x24e   : > { %649 = vadd.xlane.f32.xlu0 %v648_v35 }
 0x2cc   : > { %v629_v36 = vpop.xlane.xlu1 %628 }
 0x2cd   : > { %1039 = vlog2.f32 %v629_v36 }
 0x2cf   : > { %v632_v37 = vpop.xlane.xlu0 %631 }
 0x2d0   : > { %v641_v42 = vpop.xlane.xlu1 %640  ;;  %1041 = vlog2.f32 %v632_v37 }
 0x2d1   : > { %1043 = vlog2.f32 %v641_v42 }
 0x2d3   : > { %v644_v43 = vpop.xlane.xlu0 %643 }
 0x2d4   : > { %v635_v44 = vpop.xlane.xlu1 %634  ;;  %1045 = vlog2.f32 %v644_v43 }
 0x2d5   : > { %1047 = vlog2.f32 %v635_v44 }
 0x2d7   : > { %v1040_v45 = vpop.eup %1039  ;;  %v638_v46 = vpop.xlane.xlu0 %637 }
 0x2d8   : > { %v652_v47 = vmul.f32 0.6931472, %v1040_v45  ;;  %v647_v52 = vpop.xlane.xlu1 %646  ;;  %1049 = vlog2.f32 %v638_v46 }
 0x2d9   : > { %1051 = vlog2.f32 %v647_v52 }
 0x2da   : > { %v1042_v53 = vpop.eup %1041  ;;  %v667_v54 = vsub.f32 %v1278_v38, %v652_v47  ;;  %v668_v55 = vsub.f32 %v1280_v39, %v652_v47 }
 0x2db   : > { %v1044_v56 = vpop.eup %1043  ;;  %v654_v57 = vmul.f32 0.6931472, %v1042_v53  ;;  %v650_v62 = vpop.xlane.xlu0 %649 }
 0x2dc   : > { %683 = vst [vmem:[%s1332_s4] sm:$0xff] %v667_v54  ;;  %684 = vst [vmem:[%s1332_s4 + $0x8] sm:$0xff] %v668_v55  ;;  %v660_v63 = vmul.f32 0.6931472, %v1044_v56  ;;  %1053 = vlog2.f32 %v650_v62 }
 0x2dd   : > { %v669_v0 = vsub.f32 %v1294_v50, %v654_v57  ;;  %v670_v38 = vsub.f32 %v1296_v51, %v654_v57 }
 0x2de   : > { %v1046_v39 = vpop.eup %1045  ;;  %v675_v1 = vsub.f32 %v1282_v40, %v660_v63  ;;  %v676_v2 = vsub.f32 %v1284_v41, %v660_v63 }
 0x2df   : > { %v1048_v5 = vpop.eup %1047  ;;  %685 = vst [vmem:[%s1332_s4 + $0x10] sm:$0xff] %v669_v0  ;;  %686 = vst [vmem:[%s1332_s4 + $0x18] sm:$0xff] %v670_v38  ;;  %v662_v6 = vmul.f32 0.6931472, %v1046_v39 }
 0x2e0   : > { %691 = vst [vmem:[%s1332_s4 + $0x40] sm:$0xff] %v675_v1  ;;  %692 = vst [vmem:[%s1332_s4 + $0x48] sm:$0xff] %v676_v2  ;;  %v656_v7 = vmul.f32 0.6931472, %v1048_v5 }
 0x2e1   : > { %v677_v50 = vsub.f32 %v1290_v48, %v662_v6  ;;  %v678_v51 = vsub.f32 %v1292_v49, %v662_v6 }
 0x2e2   : > { %v1050_v8 = vpop.eup %1049  ;;  %v671_v40 = vsub.f32 %v1302_v58, %v656_v7  ;;  %v672_v41 = vsub.f32 %v1304_v59, %v656_v7 }
 0x2e3   : > { %v1052_v9 = vpop.eup %1051  ;;  %693 = vst [vmem:[%s1332_s4 + $0x50] sm:$0xff] %v677_v50  ;;  %694 = vst [vmem:[%s1332_s4 + $0x58] sm:$0xff] %v678_v51  ;;  %v658_v10 = vmul.f32 0.6931472, %v1050_v8 }
 0x2e4   : > { %687 = vst [vmem:[%s1332_s4 + $0x20] sm:$0xff] %v671_v40  ;;  %688 = vst [vmem:[%s1332_s4 + $0x28] sm:$0xff] %v672_v41  ;;  %v664_v13 = vmul.f32 0.6931472, %v1052_v9 }
 0x2e5   : > { %v673_v48 = vsub.f32 %v1314_v3, %v658_v10  ;;  %v674_v49 = vsub.f32 %v1316_v4, %v658_v10 }
 0x2e6   : > { %v1054_v58 = vpop.eup %1053  ;;  %v679_v59 = vsub.f32 %v1306_v60, %v664_v13  ;;  %v680_v14 = vsub.f32 %v1308_v61, %v664_v13 }
 0x2e7   : > { %689 = vst [vmem:[%s1332_s4 + $0x30] sm:$0xff] %v673_v48  ;;  %690 = vst [vmem:[%s1332_s4 + $0x38] sm:$0xff] %v674_v49  ;;  %v666_v15 = vmul.f32 0.6931472, %v1054_v58 }
 0x2e8   : > { %695 = vst [vmem:[%s1332_s4 + $0x60] sm:$0xff] %v679_v59  ;;  %696 = vst [vmem:[%s1332_s4 + $0x68] sm:$0xff] %v680_v14 }
 0x2e9   : > { %v681_v60 = vsub.f32 %v1321_v11, %v666_v15  ;;  %v682_v3 = vsub.f32 %v1323_v12, %v666_v15 }
 0x2eb   : > { %697 = vst [vmem:[%s1332_s4 + $0x70] sm:$0xff] %v681_v60  ;;  %698 = vst [vmem:[%s1332_s4 + $0x78] sm:$0xff] %v682_v3 }
 0x2ec   : > { %1096 = shalt.err (!%p1093_p7)
}
 0x2ed   : > { %s1097_s20 = scalar_lea.hbm %s1365_s9, 2048  ;;  %s1101_s26 = scalar_lea.hbm %s1419_s3, 4096 }
 0x2ee   : > { %p1098_p8 = scmp.ne.s32.totalorder %s1365_s9, %s1097_s20  ;;  %p1102_p1 = scmp.lt.u32.totalorder %s1365_s9, %s1419_s3 }
 0x2ef   : > { %p1103_p0 = scmp.lt.u32.totalorder %s1101_s26, %s1097_s20  ;;  %p1105_p6 = scmp.lt.u32.totalorder %s1097_s20, %s1365_s9 }
 0x2f0   : > { %p1099_p11 = pnand %p1098_p8, %p1432_p9 }
 0x2f1   : > { %p1104_p5 = por %p1103_p0, %p1102_p1 }
 0x2f2   : > { %p1100_p13 = pneg %p1099_p11 }
 0x2f3   : > { %p1106_p10 = por %p1105_p6, %p1104_p5 }
 0x2f5   : > { %p1107_p12 = pnand %p1106_p10, %p1100_p13 }
 0x2f7   : > { %1110 = shalt.err (!%p1107_p12)
}
 0x2f8   : > { %s1157_s29 = smov 256   ;;  %s1158_s30 = smov 16  }
 0x2f9   : > { %905 = dma.vmem_to_hbm [thread:$0]  (%p1432_p9), %s1367_s6, 2048, %s1365_s9, %s1375_s16, %s1157_s29, %s1157_s29, %s1158_s30  }
 0x2fa PF: > { %p917_p2 = scmp.ge.s32.totalorder %s1149_s15, 2  ;;  %s729_s4 = sand.u32 1, %s1137_s12  }
 0x2fb   : > { %p1433_p3 = scmp.ne.s32.totalorder %s1424_s23, 0  ;;  %s730_s5 = scalar_lea.sflag [#allocation4], %s729_s4 }
 0x2fd   : > { %p912_p4 = pnand %p917_p2, %p1433_p3 }
 0x2ff   : > { %1132 = dma.done.wait (!%p912_p4), %s730_s5, 2048  }
 0x300   : > { %1134 = vsyncadd (!%p912_p4), %s730_s5, 4294965248  ;;  %p14_p7 = scmp.ge.s32.totalorder %s1204_s18, 4   ;;  %s1434_s12 = smov %s1141_s13 }
 0x301   : > { %s1435_s13 = smov %s1145_s14  ;;  %s1436_s14 = smov %s1215_s21 }
 0x302   : > { %s1437_s15 = smov %s1204_s18  ;;  %16 = sbr.rel (!%p14_p7) target bundleno = 4 (0x4), region = 72 }
 0x309   :  { %735 = vsyncpa [#allocation3], 1 }
 0x30a   :  { %737 = vsyncpa [#allocation3 + $0x1], 1 }
 0x30b   :  { %738 = vsyncpa [#allocation4], 1 }
 0x30c   :  { %740 = vsyncpa [#allocation4 + $0x1], 1 }

</bundles_post_ra>
